<compile_context>
chip_gen: v5e
topology: v5e:2x2
jax: 0.10.0
libtpu: 0.0.40
codegen_flags: <defaults>
</compile_context>

<pallas_src>
import functools

import jax
import jax.numpy as jnp
from jax import lax
from jax.experimental import pallas as pl
from jax.experimental.pallas import tpu as pltpu


def bilinear_matrix(out_size: int, in_size: int, dtype=jnp.float32):
    """Interpolation matrix (out_size, in_size) for align_corners=False.

    Matches PyTorch F.interpolate(..., mode='bilinear', align_corners=False):
        src = (dst + 0.5) * (in/out) - 0.5, clamped at 0,
        i0 = floor(src), i1 = min(i0 + 1, in - 1), frac = src - i0.
    """
    scale = in_size / out_size
    dst = jnp.arange(out_size, dtype=jnp.float32)
    src = jnp.maximum((dst + 0.5) * scale - 0.5, 0.0)
    i0 = jnp.clip(jnp.floor(src).astype(jnp.int32), 0, in_size - 1)
    i1 = jnp.clip(i0 + 1, 0, in_size - 1)
    frac = src - i0.astype(jnp.float32)
    m = (jax.nn.one_hot(i0, in_size, dtype=jnp.float32) * (1.0 - frac)[:, None]
         + jax.nn.one_hot(i1, in_size, dtype=jnp.float32) * frac[:, None])
    return m.astype(dtype)


def _seg_decoder_kernel(x_ref, w_ref, b_ref, ah_ref, awt_ref, o_ref):
    # x_ref  : (N, C, Hi*Wi)     all images, channels-major, spatial flattened
    # w_ref  : (Kp, C)           zero-padded 1x1 conv weight (compute dtype)
    # b_ref  : (Kp, 1)           zero-padded bias (always f32)
    # ah_ref : (tHo, Hi)         height-interp rows for THIS grid step (f32)
    # awt_ref: (Wi, Wo)          width-interp matrix, transposed (f32)
    # o_ref  : (N, Kp, tHo, Wo)  NCHW output tile for this Ho slab
    n_img = x_ref.shape[0]
    kp = w_ref.shape[0]
    tho, hi = ah_ref.shape
    wi, wo = awt_ref.shape

    w = w_ref[...]
    b = b_ref[...]

    # 1x1 conv == channel matmul; all N images handled in this one grid step.
    # Operands may be bf16 (compute dtype, cast in-kernel); accumulation and
    # the bias add stay f32.
    convs = []
    for n in range(n_img):                                   # static unroll (N small)
        xn = x_ref[n].astype(w.dtype)                        # in-kernel cast
        convs.append(jnp.dot(w, xn, preferred_element_type=jnp.float32) + b)
    conv = jnp.stack(convs)                                  # (N, Kp, Hi*Wi) f32
    conv = conv.reshape(n_img * kp, hi, wi)                  # (B, Hi, Wi)

    # Separable bilinear upsample; both interp matmuls kept in f32.
    # 1) Height: batched (tHo,Hi)@(Hi,Wi) over B = N*Kp rows of the grid's Ho slab.
    ah = jnp.broadcast_to(ah_ref[...][None], (n_img * kp, tho, hi))
    th = lax.dot_general(ah, conv,
                         dimension_numbers=(((2,), (1,)), ((0,), (0,))),
                         preferred_element_type=jnp.float32)          # (B, tHo, Wi)

    # 2) Width: one stacked matmul over all B*tHo rows.
    out = jnp.dot(th.reshape(n_img * kp * tho, wi), awt_ref[...],
                  preferred_element_type=jnp.float32)                 # (B*tHo, Wo)
    o_ref[...] = out.reshape(n_img, kp, tho, wo).astype(o_ref.dtype)


@functools.partial(jax.jit,
                   static_argnames=("image_height", "image_width", "compute_dtype"))
def seg_decoder_forward(x, weight, bias, *, image_height, image_width,
                        compute_dtype=jnp.float32):
    """x: (N, C, H, W) NCHW; weight: (K, C, 1, 1); bias: (K,).

    compute_dtype controls only the 1x1-conv operand dtype (f32 default =
    bit-faithful PyTorch eval semantics; bf16 for MXU throughput).  The
    interpolation matmuls, accumulation, bias add and output stay f32.
    """
    N, C, H, W = x.shape
    K = weight.shape[0]
    S = H * W
    out_dtype = x.dtype

    # Pad classes to the 8-sublane vreg boundary: clean MXU M dim, unmasked
    # sublane stores.  The padded rows are exact zeros and sliced off below.
    K_pad = max(8, ((K + 7) // 8) * 8)
    w2 = jnp.zeros((K_pad, C), compute_dtype).at[:K].set(
        weight.reshape(K, C).astype(compute_dtype))
    b2 = jnp.zeros((K_pad, 1), jnp.float32).at[:K, 0].set(bias.astype(jnp.float32))

    # Separable bilinear matrices (always f32; KB-sized even at prod shapes).
    ah = bilinear_matrix(image_height, H)                    # (Ho, Hi)
    awt = bilinear_matrix(image_width, W).T                  # (Wi, Wo)

    # x stays in its input dtype; the compute-dtype cast happens in-kernel, so
    # there is no extra HBM round-trip over the activations.  Merging the
    # minor spatial dims is a free (metadata-only) reshape.
    x_flat = x.reshape(N, C, S)

    # Grid: split the output height in two ("parallel" -> one half per v7x
    # TensorCore); each step processes ALL N images, so single-TC chips see
    # at most 2 cheap steps regardless of batch size.
    n_tiles = 2 if (image_height % 16 == 0) else 1
    tile_ho = image_height // n_tiles

    flops = 2 * (n_tiles * N * K_pad * C * S                      # conv (per Ho tile)
                 + N * K_pad * image_height * H * W                # height interp
                 + N * K_pad * image_height * W * image_width)     # width interp
    bytes_accessed = 4 * (x.size + w2.size + b2.size + ah.size + awt.size
                          + N * K_pad * image_height * image_width)

    out = pl.pallas_call(
        _seg_decoder_kernel,
        out_shape=jax.ShapeDtypeStruct(
            (N, K_pad, image_height, image_width), out_dtype),
        grid=(n_tiles,),
        in_specs=[
            pl.BlockSpec((N, C, S), lambda j: (0, 0, 0)),
            pl.BlockSpec((K_pad, C), lambda j: (0, 0)),
            pl.BlockSpec((K_pad, 1), lambda j: (0, 0)),
            pl.BlockSpec((tile_ho, H), lambda j: (j, 0)),
            pl.BlockSpec((W, image_width), lambda j: (0, 0)),
        ],
        out_specs=pl.BlockSpec((N, K_pad, tile_ho, image_width),
                               lambda j: (0, 0, j, 0)),
        compiler_params=pltpu.CompilerParams(
            dimension_semantics=("parallel",)),
        cost_estimate=pl.CostEstimate(flops=flops, transcendentals=0,
                                      bytes_accessed=bytes_accessed),
    )(x_flat, w2, b2, ah, awt)

    # Drop the zero-padded classes; output is already NCHW (N, K, Ho, Wo).
    return out[:, :K]


def seg_decoder_reference(x, weight, bias, *, image_height, image_width):
    """Pure-JAX f32 reference (same math as the PyTorch module, eval mode)."""
    K = weight.shape[0]
    C = x.shape[1]
    w2 = weight.reshape(K, C)
    conv = jnp.einsum('kc,nchw->nkhw', w2, x) + bias[None, :, None, None]
    ah = bilinear_matrix(image_height, x.shape[2])
    aw = bilinear_matrix(image_width, x.shape[3])
    t = jnp.einsum('oh,nkhw->nkow', ah, conv)
    return jnp.einsum('vw,nkow->nkov', aw, t)


if __name__ == "__main__":
    # Small shapes consistent with SegDecoder:
    #   feat_channels=32, refine_layers=1 -> C=32, num_class=6,
    #   backbone feature map 8x8, upsampled to image 16x20.
    N, C, H, W = 2, 32, 8, 8
    num_class = 6
    image_height, image_width = 16, 20

    key = jax.random.PRNGKey(0)
    kx, kw, kb = jax.random.split(key, 3)
    x = jax.random.normal(kx, (N, C, H, W), dtype=jnp.float32)
    # Deterministic synthetic conv parameters (Conv2d(C, num_class, 1)).
    conv_weight = jax.random.normal(kw, (num_class, C, 1, 1), dtype=jnp.float32) * 0.1
    conv_bias = jax.random.normal(kb, (num_class,), dtype=jnp.float32) * 0.1

    ref = seg_decoder_reference(x, conv_weight, conv_bias,
                                image_height=image_height,
                                image_width=image_width)

    # 1) f32 path: bit-faithful to the PyTorch module (eval mode).
    out_f32 = jax.block_until_ready(
        seg_decoder_forward(x, conv_weight, conv_bias,
                            image_height=image_height,
                            image_width=image_width,
                            compute_dtype=jnp.float32))
    assert out_f32.shape == (N, num_class, image_height, image_width), out_f32.shape
    assert jnp.allclose(out_f32, ref, atol=1e-4, rtol=1e-4), \
        float(jnp.max(jnp.abs(out_f32 - ref)))

    # 2) bf16 conv-operand path (interp matmuls, accumulation, bias, output f32).
    out_bf16 = jax.block_until_ready(
        seg_decoder_forward(x, conv_weight, conv_bias,
                            image_height=image_height,
                            image_width=image_width,
                            compute_dtype=jnp.bfloat16))
    assert out_bf16.shape == (N, num_class, image_height, image_width), out_bf16.shape
    assert jnp.allclose(out_bf16, ref, atol=2e-2, rtol=2e-2), \
        float(jnp.max(jnp.abs(out_bf16 - ref)))

    print("KERNEL_OK")
</pallas_src>

<mosaic_0001>
module attributes {stable_mosaic.version = 11 : i64} {
  func.func @_seg_decoder_kernel(%arg0: i32, %arg1: memref<2x32x64xf32, #tpu.memory_space<vmem>>, %arg2: memref<8x32xf32, #tpu.memory_space<vmem>>, %arg3: memref<8x1xf32, #tpu.memory_space<vmem>>, %arg4: memref<8x8xf32, #tpu.memory_space<vmem>>, %arg5: memref<8x20xf32, #tpu.memory_space<vmem>>, %arg6: memref<2x8x8x20xf32, #tpu.memory_space<vmem>>) attributes {dimension_semantics = [#tpu.dimension_semantics<parallel>], iteration_bounds = array<i64: 2>, scalar_prefetch = 0 : i64, scratch_operands = 0 : i64, tpu.core_type = #tpu.core_type<tc>, window_params = [{pipeline_mode = #tpu.pipeline_mode<synchronous>, transform_indices = @transform_0, window_bounds = array<i64: 2, 32, 64>}, {pipeline_mode = #tpu.pipeline_mode<synchronous>, transform_indices = @transform_1, window_bounds = array<i64: 8, 32>}, {pipeline_mode = #tpu.pipeline_mode<synchronous>, transform_indices = @transform_2, window_bounds = array<i64: 8, 1>}, {transform_indices = @transform_3, window_bounds = array<i64: 8, 8>}, {pipeline_mode = #tpu.pipeline_mode<synchronous>, transform_indices = @transform_4, window_bounds = array<i64: 8, 20>}, {transform_indices = @transform_5, window_bounds = array<i64: 2, 8, 8, 20>}]} {
    %c0 = arith.constant 0 : index
    %c0_0 = arith.constant 0 : index
    %0 = vector.load %arg2[%c0, %c0_0] : memref<8x32xf32, #tpu.memory_space<vmem>>, vector<8x32xf32>
    %c0_1 = arith.constant 0 : index
    %c0_2 = arith.constant 0 : index
    %1 = vector.load %arg3[%c0_1, %c0_2] : memref<8x1xf32, #tpu.memory_space<vmem>>, vector<8x1xf32>
    %c0_3 = arith.constant 0 : index
    %c0_4 = arith.constant 0 : index
    %c0_5 = arith.constant 0 : index
    %2 = vector.load %arg1[%c0_3, %c0_4, %c0_5] : memref<2x32x64xf32, #tpu.memory_space<vmem>>, vector<1x32x64xf32>
    %3 = vector.shape_cast %2 : vector<1x32x64xf32> to vector<32x64xf32>
    %cst = arith.constant dense<0.000000e+00> : vector<8x64xf32>
    %4 = tpu.matmul %0, %3, %cst {dimension_numbers = #tpu.dot_dimension_numbers<[1], [0], [0], [1], [0, 0, 1, 1], [], []>} : vector<8x32xf32>, vector<32x64xf32>, vector<8x64xf32> -> vector<8x64xf32>
    %5 = vector.broadcast %1 : vector<8x1xf32> to vector<8x64xf32>
    %6 = arith.addf %4, %5 : vector<8x64xf32>
    %c1 = arith.constant 1 : index
    %c0_6 = arith.constant 0 : index
    %c0_7 = arith.constant 0 : index
    %7 = vector.load %arg1[%c1, %c0_6, %c0_7] : memref<2x32x64xf32, #tpu.memory_space<vmem>>, vector<1x32x64xf32>
    %8 = vector.shape_cast %7 : vector<1x32x64xf32> to vector<32x64xf32>
    %cst_8 = arith.constant dense<0.000000e+00> : vector<8x64xf32>
    %9 = tpu.matmul %0, %8, %cst_8 {dimension_numbers = #tpu.dot_dimension_numbers<[1], [0], [0], [1], [0, 0, 1, 1], [], []>} : vector<8x32xf32>, vector<32x64xf32>, vector<8x64xf32> -> vector<8x64xf32>
    %10 = vector.broadcast %1 : vector<8x1xf32> to vector<8x64xf32>
    %11 = arith.addf %9, %10 : vector<8x64xf32>
    %12 = vector.shape_cast %6 : vector<8x64xf32> to vector<1x8x64xf32>
    %13 = vector.shape_cast %11 : vector<8x64xf32> to vector<1x8x64xf32>
    %14 = tpu.concatenate %12, %13 in 0 : vector<1x8x64xf32>, vector<1x8x64xf32> -> vector<2x8x64xf32>
    %15 = vector.shape_cast %14 : vector<2x8x64xf32> to vector<16x8x8xf32>
    %c0_9 = arith.constant 0 : index
    %c0_10 = arith.constant 0 : index
    %16 = vector.load %arg4[%c0_9, %c0_10] : memref<8x8xf32, #tpu.memory_space<vmem>>, vector<8x8xf32>
    %17 = vector.shape_cast %16 : vector<8x8xf32> to vector<1x8x8xf32>
    %18 = vector.shape_cast %17 : vector<1x8x8xf32> to vector<1x8x8xf32>
    %19 = vector.broadcast %18 : vector<1x8x8xf32> to vector<16x8x8xf32>
    %cst_11 = arith.constant dense<0.000000e+00> : vector<16x8x8xf32>
    %20 = tpu.matmul %19, %15, %cst_11 {dimension_numbers = #tpu.dot_dimension_numbers<[2], [1], [1], [2], [0, 0, 0, 1, 1, 2], [0], [0]>} : vector<16x8x8xf32>, vector<16x8x8xf32>, vector<16x8x8xf32> -> vector<16x8x8xf32>
    %21 = vector.shape_cast %20 : vector<16x8x8xf32> to vector<128x8xf32>
    %c0_12 = arith.constant 0 : index
    %c0_13 = arith.constant 0 : index
    %22 = vector.load %arg5[%c0_12, %c0_13] : memref<8x20xf32, #tpu.memory_space<vmem>>, vector<8x20xf32>
    %cst_14 = arith.constant dense<0.000000e+00> : vector<128x20xf32>
    %23 = tpu.matmul %21, %22, %cst_14 {dimension_numbers = #tpu.dot_dimension_numbers<[1], [0], [0], [1], [0, 0, 1, 1], [], []>} : vector<128x8xf32>, vector<8x20xf32>, vector<128x20xf32> -> vector<128x20xf32>
    %24 = vector.shape_cast %23 : vector<128x20xf32> to vector<2x8x8x20xf32>
    %c0_15 = arith.constant 0 : index
    %c0_16 = arith.constant 0 : index
    %c0_17 = arith.constant 0 : index
    %c0_18 = arith.constant 0 : index
    %25 = vector.load %arg6[%c0_15, %c0_16, %c0_17, %c0_18] : memref<2x8x8x20xf32, #tpu.memory_space<vmem>>, vector<2x8x8x20xf32>
    tpu.vector_store %arg6[%c0_15, %c0_16, %c0_17, %c0_18], %24 {strides = array<i32>} : memref<2x8x8x20xf32, #tpu.memory_space<vmem>>, vector<2x8x8x20xf32>,
    return
  }
  func.func @transform_0(%arg0: i32) -> (i32, i32, i32) {
    %c0_i32 = arith.constant 0 : i32
    %c0_i32_0 = arith.constant 0 : i32
    %c0_i32_1 = arith.constant 0 : i32
    %c0_i32_2 = arith.constant 0 : i32
    return %c0_i32, %c0_i32_0, %c0_i32_1 : i32, i32, i32
  }
  func.func @transform_1(%arg0: i32) -> (i32, i32) {
    %c0_i32 = arith.constant 0 : i32
    %c0_i32_0 = arith.constant 0 : i32
    %c0_i32_1 = arith.constant 0 : i32
    return %c0_i32, %c0_i32_0 : i32, i32
  }
  func.func @transform_2(%arg0: i32) -> (i32, i32) {
    %c0_i32 = arith.constant 0 : i32
    %c0_i32_0 = arith.constant 0 : i32
    %c0_i32_1 = arith.constant 0 : i32
    return %c0_i32, %c0_i32_0 : i32, i32
  }
  func.func @transform_3(%arg0: i32) -> (i32, i32) {
    %c0_i32 = arith.constant 0 : i32
    %c0_i32_0 = arith.constant 0 : i32
    return %arg0, %c0_i32 : i32, i32
  }
  func.func @transform_4(%arg0: i32) -> (i32, i32) {
    %c0_i32 = arith.constant 0 : i32
    %c0_i32_0 = arith.constant 0 : i32
    %c0_i32_1 = arith.constant 0 : i32
    return %c0_i32, %c0_i32_0 : i32, i32
  }
  func.func @transform_5(%arg0: i32) -> (i32, i32, i32, i32) {
    %c0_i32 = arith.constant 0 : i32
    %c0_i32_0 = arith.constant 0 : i32
    %c0_i32_1 = arith.constant 0 : i32
    %c0_i32_2 = arith.constant 0 : i32
    return %c0_i32, %c0_i32_0, %arg0, %c0_i32_1 : i32, i32, i32, i32
  }
}

</mosaic_0001>

<bundles_post_ra>
// kernel: seg_decoder_forward.1
= control target key start
LH: loop header
LB: loop body
LE: loop exit
PB: predicated region body
PF: predicated region fallthrough
CT: control target
= control target key end

     0   :  { %s1304_s18 = smov 0   ;;  %s1306_s19 = smov 0   ;;  %s1604_s0 = inlined_call_operand.vmem [shape: f32[2,32,64], index: 0, kind: input, shape index: {}]   ;;  %s1605_s1 = inlined_call_operand.vmem [shape: f32[8,32], index: 1, kind: input, shape index: {}]   ;;  %s1606_s2 = inlined_call_operand.vmem [shape: f32[8,1], index: 2, kind: input, shape index: {}]   ;;  %s1607_s3 = inlined_call_operand.vmem [shape: f32[16,8], index: 3, kind: input, shape index: {}]   ;;  %s1608_s4 = inlined_call_operand.vmem [shape: f32[8,20], index: 4, kind: input, shape index: {}]   ;;  %s1609_s5 = inlined_call_operand.vmem [shape: f32[2,8,16,20], index: 5, kind: output, shape index: {}]  }
   0x1   :  { %s1308_s20 = smov 0  }
   0x2 LB: > { %s1317_s21 = sadd.s32 4294967295, %s1262_s20   ;;  %s1319_s22 = sadd.s32 1, %s1262_s20   ;;  %s1262_s20 = sphi %s1308_s20, %s1613_s20   ;;  %s1258_s19 = sphi %s1306_s19, %s1612_s19   ;;  %s1254_s18 = sphi %s1304_s18, %s1611_s18  }
   0x3   : > { %s129_s23 = ssub.s32 %s1262_s20, %s1319_s22  ;;  %s132_s24 = sadd.s32 1, %s1258_s19 }
   0x4   : > { %p130_p0 = scmp.eq.s32.totalorder %s129_s23, 0  ;;  %p142_p1 = scmp.ne.s32.totalorder %s1258_s19, %s1254_s18 }
   0x5   : > { %p143_p2 = scmp.eq.s32.totalorder %s1317_s21, 1  ;;  %p1157_p3 = scmp.ge.s32.totalorder %s1262_s20, 1 }
   0x6   : > { %s1327_s25 = scalar_select %p130_p0, %s1258_s19, %s132_s24  }
   0x7   : > { %p1329_p4 = por %p143_p2, %p142_p1  ;;  %p186_p5 = scmp.lt.s32.totalorder %s1262_s20, 3 }
   0x9   : > { %p187_p6 = pnand %p1157_p3, %p186_p5 }
   0xa   : > { %s1265_s28 = smov (!%p187_p6), 80   ;;  %s1266_s29 = smov (!%p187_p6), 104  }
   0xb   : > { %190 = sbr.rel (%p187_p6) target bundleno = 621 (0x26d), region = 40  ;;  %s1267_s30 = smov (!%p187_p6), 72  }
   0xc   : > { %s1268_s6 = smov (!%p187_p6), 120   ;;  %s1269_s7 = smov (!%p187_p6), 88  }
   0xd   : > { %s1270_s8 = smov (!%p187_p6), 112   ;;  %s1271_s9 = smov (!%p187_p6), 96  }
   0xe   : > { %p212_p7 = scmp.lt.s32.totalorder (!%p187_p6), %s1317_s21, 1  ;;  %s209_s17 = sand.u32 (!%p187_p6), 1, %s1254_s18  }
   0xf   : > { %s1158_s20 = sshll.u32 (!%p187_p6), %s209_s17, 7 }
  0x10   : > { %v221_v0 = vld [vmem:[%s1604_s0 + $0x18] sm:$0xff]  ;;  %v220_v1 = vld [vmem:[%s1604_s0 + $0x10] sm:$0xff]  ;;  %v1264_v3 = vmov 0   ;;  %v219_v4 = vld [vmem:[%s1604_s0 + $0x8] sm:$0xff]  ;;  %vm227_vm0 = vcmask 261120   ;;  %vm321_vm1 = vcmask 1047556  }
  0x11   : > { %243 = vmatpush.msra.mxu3 %v221_v0  ;;  %v1164_v2 = vld [vmem:[%s1604_s0 + $0x38] sm:$0xff]  ;;  %1239 = vset.pattern.permute.xlu0 %v1264_v3  ;;  %v1163_v5 = vld [vmem:[%s1604_s0 + $0x30] sm:$0xff]  ;;  %v1162_v6 = vld [vmem:[%s1604_s0 + $0x28] sm:$0xff]  ;;  %v1272_v21 = vmov 1983009808   ;;  %s1391_s10 = scalar_select %p212_p7, %s1317_s21, 1 }
  0x12   : > { %268 = vmatpush.msra.mxu1 %v1164_v2  ;;  %v217_v7 = vld [vmem:[%s1606_s2] sm:$0xff]  ;;  %v326_v22 = vunpack.c.l.s4 %v1272_v21  ;;  %v1273_v39 = vmov 1934713408   ;;  %vm546_vm2 = vcmask 64512   ;;  %vm984_vm3 = vcmask 162816   ;;  %s1538_s23 = scalar_lea.vmem [#allocation2], %s1158_s20 }
  0x13   : > { %244 = vmatpush.msra.mxu3 %v220_v1  ;;  %v218_v8 = vld [vmem:[%s1604_s0] sm:$0xff]  ;;  %224 = vperm.xlu0 %1239, %v217_v7   ;;  %v374_v40 = vunpack.c.l.s4 %v1273_v39  ;;  %s1159_s11 = sshll.u32 %s1391_s10, 3  ;;  %s1199_s18 = sshll.u32 (%p1329_p4), %s1317_s21, 3 }
  0x14   : > { %269 = vmatpush.msra.mxu1 %v1163_v5  ;;  %v216_v9 = vld [vmem:[%s1605_s1] sm:$0xff]  ;;  %v1376_v26 = vunpack.c.0.s8 %v326_v22  ;;  %s215_s14 = scalar_lea.vmem %s1607_s3, %s1159_s11 }
  0x15   : > { %245 = vmatpush.msra.mxu3 %v219_v4  ;;  %v1161_v10 = vld [vmem:[%s1604_s0 + $0x20] sm:$0xff]  ;;  %v1400_v54 = vunpack.c.0.s8 %v374_v40 }
  0x16   : > { %270 = vmatpush.msra.mxu1 %v1162_v6 }
  0x17   : > { %246 = vmatpush.msra.mxu3 %v218_v8 }
  0x18   : > { %1160 = vmatmul.msk.f32.vlgmr.msra.gmra.mxu3 %vm227_vm0, %v216_v9  ;;  %271 = vmatpush.msra.mxu1 %v1161_v10 }
  0x19   : > { %1165 = vmatmul.msk.f32.vlgmr.msra.gmra.mxu1 %vm227_vm0, %v216_v9 }
  0x85   : > { %v225_v11 = vpop.permute.xlu0 %224 }
  0x96   : > { %v273_v14 = vpop.f32.mrf.mxu1 }
  0x97   : > { %v1363_v15 = vadd.f32 %v273_v14, %v225_v11 }
  0x99   : > { %v435_v49 = vrot.slane %v1363_v15, 4 }
  0x9b   : > { %v248_v12 = vpop.f32.mrf.mxu3 }
  0x9c   : > { %v249_v13 = vadd.f32 %v248_v12, %v225_v11 }
  0x9e   : > { %308 = vrot.lane.b32.xlu2 %v249_v13, %s1265_s28  ;;  %290 = vrot.lane.b32.xlu1 %v249_v13, %s1266_s29  ;;  %v323_v30 = vrot.slane %v249_v13, 4 }
  0x9f   : > { %314 = vrot.lane.b32.xlu0 %v249_v13, %s1267_s30 }
  0xa6   : > { %278 = vrot.lane.b32.xlu2 %v249_v13, %s1268_s6  ;;  %302 = vrot.lane.b32.xlu1 %v249_v13, %s1269_s7 }
  0xa7   : > { %284 = vrot.lane.b32.xlu0 %v249_v13, %s1270_s8 }
  0xae   : > { %310 = vrot.lane.b32.xlu2 %v1363_v15, %s1265_s28  ;;  %296 = vrot.lane.b32.xlu1 %v249_v13, %s1271_s9  ;;  %s1009_s28 = scalar_lea.vmem (%p1329_p4), %s1609_s5, %s1199_s18 }
  0xaf   : > { %286 = vrot.lane.b32.xlu0 %v1363_v15, %s1270_s8 }
  0xb6   : > { %316 = vrot.lane.b32.xlu2 %v1363_v15, %s1267_s30  ;;  %298 = vrot.lane.b32.xlu1 %v1363_v15, %s1271_s9 }
  0xb7   : > { %292 = vrot.lane.b32.xlu0 %v1363_v15, %s1266_s29 }
  0xbe   : > { %280 = vrot.lane.b32.xlu2 %v1363_v15, %s1268_s6  ;;  %304 = vrot.lane.b32.xlu1 %v1363_v15, %s1269_s7 }
  0xf8   : > { %v309_v16 = vpop.permute.xlu2 %308 }
  0xf9   : > { %v345_v46 = vrot.slane %v309_v16, 4 }
 0x100   : > { %v279_v17 = vpop.permute.xlu2 %278 }
 0x101   : > { %v335_v24 = vrot.slane %v279_v17, 4 }
 0x108   : > { %v1372_v18 = vpop.permute.xlu2 %310 }
 0x109   : > { %v457_v55 = vrot.slane %v1372_v18, 4 }
 0x110   : > { %v291_v19 = vpop.permute.xlu1 %290  ;;  %v1374_v25 = vpop.permute.xlu2 %316 }
 0x111   : > { %v315_v20 = vpop.permute.xlu0 %314  ;;  %v333_v23 = vrot.slane %v291_v19, 4  ;;  %v336_v28 = vsel %vm321_vm1, %v291_v19, %v335_v24 }
 0x112   : > { %v357_v32 = vrot.slane %v315_v20, 4  ;;  %v344_v35 = vperm.slane %v336_v28, %v1376_v26 }
 0x113   : > { %v334_v27 = vsel %vm321_vm1, %v333_v23, %v279_v17 }
 0x114   : > { %v340_v31 = vperm.slane %v334_v27, %v1376_v26  ;;  %v381_v47 = vrot.slane %v344_v35, 4 }
 0x116   : > { %v369_v44 = vrot.slane %v340_v31, 4 }
 0x118   : > { %v303_v29 = vpop.permute.xlu1 %302  ;;  %v1396_v50 = vpop.permute.xlu2 %280 }
 0x119   : > { %v359_v33 = vrot.slane %v303_v29, 4  ;;  %v285_v34 = vpop.permute.xlu0 %284  ;;  %v358_v38 = vsel %vm321_vm1, %v357_v32, %v303_v29  ;;  %v447_v0 = vrot.slane %v1396_v50, 4 }
 0x11a   : > { %v320_v36 = vrot.slane %v285_v34, 4  ;;  %v324_v37 = vsel %vm321_vm1, %v285_v34, %v323_v30  ;;  %v364_v48 = vperm.slane %v358_v38, %v1376_v26 }
 0x11b   : > { %v360_v41 = vsel %vm321_vm1, %v315_v20, %v359_v33  ;;  %v332_v43 = vperm.slane %v324_v37, %v1376_v26  ;;  %v1426_v20 = vld [vmem:[%s215_s14] sm:$0xff] }
 0x11c   : > { %v322_v42 = vsel %vm321_vm1, %v320_v36, %v249_v13  ;;  %v368_v51 = vperm.slane %v360_v41, %v1376_v26  ;;  %v393_v1 = vrot.slane %v364_v48, 4 }
 0x11d   : > { %v328_v45 = vperm.slane %v322_v42, %v1376_v26  ;;  %v383_v56 = vrot.slane %v332_v43, 4  ;;  %v382_v58 = vsel %vm321_vm1, %v381_v47, %v332_v43 }
 0x11e   : > { %v405_v4 = vrot.slane %v368_v51, 4  ;;  %v388_v11 = vperm.slane %v382_v58, %v1400_v54 }
 0x11f   : > { %v371_v52 = vrot.slane %v328_v45, 4  ;;  %v370_v53 = vsel %vm321_vm1, %v369_v44, %v328_v45  ;;  %v384_v12 = vsel %vm321_vm1, %v344_v35, %v383_v56 }
 0x120   : > { %v297_v57 = vpop.permute.xlu1 %296  ;;  %v376_v62 = vperm.slane %v370_v53, %v1400_v54  ;;  %v427_v37 = vrot.slane %v388_v11, 4 }
 0x121   : > { %v346_v59 = vsel %vm321_vm1, %v345_v46, %v297_v57  ;;  %v347_v60 = vrot.slane %v297_v57, 4  ;;  %v287_v61 = vpop.permute.xlu0 %286  ;;  %v372_v63 = vsel %vm321_vm1, %v340_v31, %v371_v52  ;;  %v392_v31 = vperm.slane %v384_v12, %v1400_v54 }
 0x122   : > { %v352_v2 = vperm.slane %v346_v59, %v1376_v26  ;;  %v433_v3 = vrot.slane %v287_v61, 4  ;;  %v436_v6 = vsel %vm321_vm1, %v287_v61, %v435_v49  ;;  %v380_v7 = vperm.slane %v372_v63, %v1400_v54 }
 0x123   : > { %v348_v5 = vsel %vm321_vm1, %v309_v16, %v347_v60  ;;  %v419_v16 = vrot.slane %v376_v62, 4  ;;  %v1424_v19 = vperm.slane %v436_v6, %v1376_v26  ;;  %v431_v49 = vrot.slane %v392_v31, 4 }
 0x124   : > { %v356_v8 = vperm.slane %v348_v5, %v1376_v26  ;;  %v395_v9 = vrot.slane %v352_v2, 4  ;;  %v394_v10 = vsel %vm321_vm1, %v393_v1, %v352_v2  ;;  %v434_v13 = vsel %vm321_vm1, %v433_v3, %v1363_v15 }
 0x125   : > { %v400_v14 = vperm.slane %v394_v10, %v1400_v54  ;;  %v423_v28 = vrot.slane %v380_v7, 4  ;;  %v440_v15 = vperm.slane %v434_v13, %v1376_v26  ;;  %v495_v38 = vrot.slane %v1424_v19, 4 }
 0x126   : > { %v407_v17 = vrot.slane %v356_v8, 4  ;;  %v396_v21 = vsel %vm321_vm1, %v364_v48, %v395_v9  ;;  %v406_v22 = vsel %vm321_vm1, %v405_v4, %v356_v8  ;;  %v469_v59 = vrot.slane %v1374_v25, 4 }
 0x127   : > { %v420_v23 = vsel %vm321_vm1, %v400_v14, %v419_v16  ;;  %v417_v24 = vrot.slane %v400_v14, 4  ;;  %v404_v27 = vperm.slane %v396_v21, %v1400_v54  ;;  %v412_v30 = vperm.slane %v406_v22, %v1400_v54 }
 0x128   : > { %v299_v29 = vpop.permute.xlu1 %298  ;;  %585 = vmatpush.msrb.mxu3 %v420_v23  ;;  %v408_v32 = vsel %vm321_vm1, %v368_v51, %v407_v17  ;;  %v483_v46 = vrot.slane %v440_v15, 4 }
 0x129   : > { %v459_v33 = vrot.slane %v299_v29, 4  ;;  %v293_v34 = vpop.permute.xlu0 %292  ;;  %v418_v35 = vsel %vm321_vm1, %v417_v24, %v376_v62  ;;  %1167 = vmatmul.msk.f32.vlgmr.msrb.gmra.mxu3 %vm546_vm2, %v1426_v20  ;;  %v424_v36 = vsel %vm321_vm1, %v404_v27, %v423_v28  ;;  %v421_v41 = vrot.slane %v404_v27, 4 }
 0x12a   : > { %v445_v39 = vrot.slane %v293_v34, 4  ;;  %v448_v40 = vsel %vm321_vm1, %v293_v34, %v447_v0  ;;  %565 = vmatpush.msra.mxu2 %v418_v35  ;;  %625 = vmatpush.msra.mxu3 %v424_v36  ;;  %v458_v42 = vsel %vm321_vm1, %v457_v55, %v299_v29  ;;  %v425_v44 = vrot.slane %v412_v30, 4 }
 0x12b   : > { %v456_v43 = vperm.slane %v448_v40, %v1376_v26  ;;  %1166 = vmatmul.msk.f32.vlgmr.msra.gmra.mxu2 %vm546_vm2, %v1426_v20  ;;  %v416_v45 = vperm.slane %v408_v32, %v1400_v54  ;;  %v422_v48 = vsel %vm321_vm1, %v421_v41, %v380_v7  ;;  %v460_v51 = vsel %vm321_vm1, %v1372_v18, %v459_v33  ;;  %v870_v41 = vld [vmem:[%s1608_s4] sm:$0xff] }
 0x12c   : > { %v446_v47 = vsel %vm321_vm1, %v445_v39, %v1396_v50  ;;  %605 = vmatpush.msrb.mxu2 %v422_v48  ;;  %v426_v55 = vsel %vm321_vm1, %v425_v44, %v388_v11  ;;  %v464_v56 = vperm.slane %v458_v42, %v1376_v26  ;;  %v428_v50 = vsel %vm321_vm1, %v412_v30, %v427_v37 }
 0x12d   : > { %v452_v52 = vperm.slane %v446_v47, %v1376_v26  ;;  %v496_v53 = vsel %vm321_vm1, %v456_v43, %v495_v38  ;;  %v493_v57 = vrot.slane %v456_v43, 4  ;;  %645 = vmatpush.msra.mxu0 %v426_v55  ;;  %v432_v58 = vsel %vm321_vm1, %v416_v45, %v431_v49 }
 0x12e   : > { %705 = vmatpush.msrb.mxu3 %v432_v58  ;;  %v429_v61 = vrot.slane %v416_v45, 4  ;;  %v468_v62 = vperm.slane %v460_v51, %v1376_v26  ;;  %v504_v63 = vperm.slane %v496_v53, %v1400_v54  ;;  %1170 = vmatmul.msk.f32.vlgmr.msra.gmra.mxu0 %vm546_vm2, %v1426_v20  ;;  %v507_v6 = vrot.slane %v464_v56, 4 }
 0x12f   : > { %v481_v60 = vrot.slane %v452_v52, 4  ;;  %v484_v18 = vsel %vm321_vm1, %v452_v52, %v483_v46  ;;  %665 = vmatpush.msrb.mxu0 %v428_v50  ;;  %v494_v7 = vsel %vm321_vm1, %v493_v57, %v1424_v19 }
 0x130   : > { %v305_v0 = vpop.permute.xlu1 %304  ;;  %v492_v1 = vperm.slane %v484_v18, %v1400_v54  ;;  %v430_v2 = vsel %vm321_vm1, %v429_v61, %v392_v31  ;;  %v519_v11 = vrot.slane %v468_v62, 4  ;;  %v543_v19 = vrot.slane %v504_v63, 4 }
 0x131   : > { %v470_v3 = vsel %vm321_vm1, %v469_v59, %v305_v0  ;;  %v471_v4 = vrot.slane %v305_v0, 4  ;;  %1169 = vmatmul.msk.f32.vlgmr.msra.gmra.mxu3 %vm546_vm2, %v1426_v20  ;;  %v482_v5 = vsel %vm321_vm1, %v481_v60, %v440_v15  ;;  %685 = vmatpush.msra.mxu2 %v430_v2  ;;  %v500_v21 = vperm.slane %v494_v7, %v1400_v54 }
 0x132   : > { %v476_v8 = vperm.slane %v470_v3, %v1376_v26  ;;  %v488_v9 = vperm.slane %v482_v5, %v1400_v54  ;;  %v535_v17 = vrot.slane %v492_v1, 4 }
 0x133   : > { %v472_v10 = vsel %vm321_vm1, %v1374_v25, %v471_v4  ;;  %1168 = vmatmul.msk.f32.vlgmr.msrb.gmra.mxu2 %vm546_vm2, %v1426_v20  ;;  %v539_v35 = vrot.slane %v500_v21, 4 }
 0x134   : > { %v480_v12 = vperm.slane %v472_v10, %v1376_v26  ;;  %v505_v13 = vrot.slane %v476_v8, 4  ;;  %v508_v14 = vsel %vm321_vm1, %v476_v8, %v507_v6  ;;  %v531_v24 = vrot.slane %v488_v9, 4 }
 0x135   : > { %v516_v16 = vperm.slane %v508_v14, %v1400_v54 }
 0x136   : > { %v517_v22 = vrot.slane %v480_v12, 4  ;;  %v506_v23 = vsel %vm321_vm1, %v505_v13, %v464_v56  ;;  %v520_v25 = vsel %vm321_vm1, %v480_v12, %v519_v11  ;;  %1171 = vmatmul.msk.f32.vlgmr.msrb.gmra.mxu0 %vm546_vm2, %v1426_v20 }
 0x137   : > { %v536_v27 = vsel %vm321_vm1, %v516_v16, %v535_v17  ;;  %v512_v28 = vperm.slane %v506_v23, %v1400_v54  ;;  %v533_v26 = vrot.slane %v516_v16, 4  ;;  %v528_v15 = vperm.slane %v520_v25, %v1400_v54 }
 0x138   : > { %785 = vmatpush.msra.mxu3 %v536_v27  ;;  %v518_v29 = vsel %vm321_vm1, %v517_v22, %v468_v62 }
 0x139   : > { %1173 = vmatmul.msk.f32.vlgmr.msrb.gmra.mxu3 %vm546_vm2, %v1426_v20  ;;  %v529_v30 = vrot.slane %v512_v28, 4  ;;  %v532_v31 = vsel %vm321_vm1, %v512_v28, %v531_v24  ;;  %v534_v32 = vsel %vm321_vm1, %v533_v26, %v492_v1  ;;  %v544_v33 = vsel %vm321_vm1, %v528_v15, %v543_v19 }
 0x13a   : > { %745 = vmatpush.msrb.mxu1 %v532_v31  ;;  %765 = vmatpush.msrb.mxu2 %v534_v32  ;;  %v524_v34 = vperm.slane %v518_v29, %v1400_v54  ;;  %v541_v36 = vrot.slane %v528_v15, 4 }
 0x13b   : > { %865 = vmatpush.msrb.mxu3 %v544_v33  ;;  %1172 = vmatmul.msk.f32.vlgmr.msra.gmra.mxu2 %vm546_vm2, %v1426_v20  ;;  %v530_v37 = vsel %vm321_vm1, %v529_v30, %v488_v9 }
 0x13c   : > { %725 = vmatpush.msra.mxu0 %v530_v37  ;;  %v540_v38 = vsel %vm321_vm1, %v524_v34, %v539_v35  ;;  %v542_v39 = vsel %vm321_vm1, %v541_v36, %v504_v63  ;;  %v537_v40 = vrot.slane %v524_v34, 4  ;;  %1175 = vmatmul.msk.f32.vlgmr.msrb.gmra.mxu1 %vm546_vm2, %v1426_v20 }
 0x13d   : > { %825 = vmatpush.msra.mxu1 %v540_v38  ;;  %845 = vmatpush.msra.mxu2 %v542_v39 }
 0x13e   : > { %v538_v54 = vsel %vm321_vm1, %v537_v40, %v500_v21  ;;  %1174 = vmatmul.msk.f32.vlgmr.msra.gmra.mxu0 %vm546_vm2, %v1426_v20 }
 0x13f   : > { %805 = vmatpush.msrb.mxu0 %v538_v54  ;;  %1202 = vmatpush.msrb.mxu1 %v870_v41 }
 0x141   : > { %1177 = vmatmul.msk.f32.vlgmr.msra.gmra.mxu3 %vm546_vm2, %v1426_v20  ;;  %934 = vmatpush.msra.mxu0 %v870_v41 }
 0x142   : > { %1204 = vmatpush.msra.mxu3 %v870_v41 }
 0x143   : > { %1176 = vmatmul.msk.f32.vlgmr.msrb.gmra.mxu2 %vm546_vm2, %v1426_v20 }
 0x144   : > { %1179 = vmatmul.msk.f32.vlgmr.msra.gmra.mxu1 %vm546_vm2, %v1426_v20  ;;  %1203 = vmatpush.msrb.mxu2 %v870_v41 }
 0x146   : > { %1178 = vmatmul.msk.f32.vlgmr.msrb.gmra.mxu0 %vm546_vm2, %v1426_v20 }
 0x149   : > { %1181 = vmatmul.msk.f32.vlgmr.msrb.gmra.mxu3 %vm546_vm2, %v1426_v20 }
 0x14b   : > { %1180 = vmatmul.msk.f32.vlgmr.msra.gmra.mxu2 %vm546_vm2, %v1426_v20 }
 0x1ab   : > { %v647_v42 = vpop.f32.mrf.mxu0 }
 0x1ac   : > { %v587_v44 = vpop.f32.mrf.mxu3 }
 0x1ae   : > { %v567_v43 = vpop.f32.mrf.mxu2 }
 0x1af   : > { %1182 = vmatmul.msk.f32.vlgmr.msra.gmra.mxu0 %vm546_vm2, %v567_v43 }
 0x1b3   : > { %v667_v45 = vpop.f32.mrf.mxu0 }
 0x1b4   : > { %1187 = vmatmul.msk.f32.vlgmr.msrb.gmra.mxu1 %vm546_vm2, %v667_v45  ;;  %v627_v20 = vpop.f32.mrf.mxu3 }
 0x1b6   : > { %v607_v46 = vpop.f32.mrf.mxu2 }
 0x1b7   : > { %1183 = vmatmul.msk.f32.gmra.mxu0 %vm546_vm2, %v587_v44 }
 0x1b9   : > { %v747_v55 = vpop.f32.mrf.mxu1 }
 0x1bb   : > { %v727_v51 = vpop.f32.mrf.mxu0 }
 0x1bc   : > { %v707_v48 = vpop.f32.mrf.mxu3 }
 0x1be   : > { %v687_v47 = vpop.f32.mrf.mxu2 }
 0x1bf   : > { %1184 = vmatmul.msk.f32.gmra.mxu0 %vm546_vm2, %v607_v46  ;;  %1188 = vmatmul.msk.f32.gmra.mxu1 %vm546_vm2, %v687_v47 }
 0x1c1   : > { %v827_v58 = vpop.f32.mrf.mxu1 }
 0x1c3   : > { %v807_v56 = vpop.f32.mrf.mxu0 }
 0x1c4   : > { %v787_v52 = vpop.f32.mrf.mxu3 }
 0x1c6   : > { %v767_v49 = vpop.f32.mrf.mxu2 }
 0x1c7   : > { %1185 = vmatmul.msk.f32.gmra.mxu0 %vm546_vm2, %v627_v20  ;;  %1189 = vmatmul.msk.f32.gmra.mxu1 %vm546_vm2, %v707_v48 }
 0x1c8   : > { %1192 = vmatmul.msk.f32.vlgmr.msrb.gmra.mxu2 %vm546_vm2, %v767_v49 }
 0x1cc   : > { %v867_v57 = vpop.f32.mrf.mxu3 }
 0x1ce   : > { %v847_v53 = vpop.f32.mrf.mxu2 }
 0x1cf   : > { %1186 = vmatmul.msk.f32.gmra.mxu0 %vm546_vm2, %v647_v42  ;;  %1190 = vmatmul.msk.f32.gmra.mxu1 %vm546_vm2, %v727_v51 }
 0x1d0   : > { %1193 = vmatmul.msk.f32.gmra.mxu2 %vm546_vm2, %v787_v52  ;;  %1196 = vmatmul.msk.f32.vlgmr.msra.gmra.mxu3 %vm546_vm2, %v847_v53 }
 0x1d7   : > { %1191 = vmatmul.msk.f32.gmra.mxu1 %vm546_vm2, %v747_v55 }
 0x1d8   : > { %1194 = vmatmul.msk.f32.gmra.mxu2 %vm546_vm2, %v807_v56  ;;  %1197 = vmatmul.msk.f32.gmra.mxu3 %vm546_vm2, %v867_v57 }
 0x1e0   : > { %1195 = vmatmul.msk.f32.gmra.mxu2 %vm546_vm2, %v827_v58 }
 0x22c   : > { %v936_v50 = vpop.f32.mrf.mxu0 }
 0x22d   : > { %985 = vst.msk [vmem:[%s1538_s23] sm:$0xff] %vm984_vm3, %v936_v50 }
 0x231   : > { %v951_v59 = vpop.f32.mrf.mxu1 }
 0x232   : > { %990 = vst.msk [vmem:[%s1538_s23 + $0x28] sm:$0xff] %vm984_vm3, %v951_v59 }
 0x234   : > { %v939_v60 = vpop.f32.mrf.mxu0  ;;  %v1068_v9 = vld [vmem:[%s1538_s23] sm:$0xff] (%p1329_p4) }
 0x235   : > { %986 = vst.msk [vmem:[%s1538_s23 + $0x8] sm:$0xff] %vm984_vm3, %v939_v60 }
 0x236   : > { %1069 = vst [vmem:[%s1009_s28] sm:$0xff] (%p1329_p4), %v1068_v9 }
 0x239   : > { %v1078_v14 = vld [vmem:[%s1538_s23 + $0x28] sm:$0xff] (%p1329_p4) }
 0x23a   : > { %1079 = vst [vmem:[%s1009_s28 + $0x50] sm:$0xff] (%p1329_p4), %v1078_v14 }
 0x23c   : > { %v942_v18 = vpop.f32.mrf.mxu0  ;;  %v954_v61 = vpop.f32.mrf.mxu1  ;;  %v1070_v10 = vld [vmem:[%s1538_s23 + $0x8] sm:$0xff] (%p1329_p4) }
 0x23d   : > { %987 = vst.msk [vmem:[%s1538_s23 + $0x10] sm:$0xff] %vm984_vm3, %v942_v18 }
 0x23e   : > { %991 = vst.msk [vmem:[%s1538_s23 + $0x30] sm:$0xff] %vm984_vm3, %v954_v61 }
 0x23f   : > { %1071 = vst [vmem:[%s1009_s28 + $0x10] sm:$0xff] (%p1329_p4), %v1070_v10 }
 0x244   : > { %v945_v62 = vpop.f32.mrf.mxu0  ;;  %v957_v63 = vpop.f32.mrf.mxu1  ;;  %v1072_v11 = vld [vmem:[%s1538_s23 + $0x10] sm:$0xff] (%p1329_p4) }
 0x245   : > { %988 = vst.msk [vmem:[%s1538_s23 + $0x18] sm:$0xff] %vm984_vm3, %v945_v62  ;;  %v1080_v16 = vld [vmem:[%s1538_s23 + $0x30] sm:$0xff] (%p1329_p4) }
 0x246   : > { %992 = vst.msk [vmem:[%s1538_s23 + $0x38] sm:$0xff] %vm984_vm3, %v957_v63 }
 0x247   : > { %1073 = vst [vmem:[%s1009_s28 + $0x20] sm:$0xff] (%p1329_p4), %v1072_v11 }
 0x248   : > { %1081 = vst [vmem:[%s1009_s28 + $0x60] sm:$0xff] (%p1329_p4), %v1080_v16 }
 0x24b   : > { %v966_v0 = vpop.f32.mrf.mxu2 }
 0x24c   : > { %995 = vst.msk [vmem:[%s1538_s23 + $0x50] sm:$0xff] %vm984_vm3, %v966_v0  ;;  %v948_v1 = vpop.f32.mrf.mxu0  ;;  %v960_v2 = vpop.f32.mrf.mxu1  ;;  %v1074_v12 = vld [vmem:[%s1538_s23 + $0x18] sm:$0xff] (%p1329_p4) }
 0x24d   : > { %989 = vst.msk [vmem:[%s1538_s23 + $0x20] sm:$0xff] %vm984_vm3, %v948_v1  ;;  %v1082_v17 = vld [vmem:[%s1538_s23 + $0x38] sm:$0xff] (%p1329_p4) }
 0x24e   : > { %993 = vst.msk [vmem:[%s1538_s23 + $0x40] sm:$0xff] %vm984_vm3, %v960_v2 }
 0x24f   : > { %1075 = vst [vmem:[%s1009_s28 + $0x30] sm:$0xff] (%p1329_p4), %v1074_v12 }
 0x250   : > { %1083 = vst [vmem:[%s1009_s28 + $0x70] sm:$0xff] (%p1329_p4), %v1082_v17 }
 0x253   : > { %v969_v3 = vpop.f32.mrf.mxu2  ;;  %v978_v4 = vpop.f32.mrf.mxu3  ;;  %v1088_v22 = vld [vmem:[%s1538_s23 + $0x50] sm:$0xff] (%p1329_p4) }
 0x254   : > { %996 = vst.msk [vmem:[%s1538_s23 + $0x58] sm:$0xff] %vm984_vm3, %v969_v3  ;;  %v963_v5 = vpop.f32.mrf.mxu1  ;;  %v1076_v13 = vld [vmem:[%s1538_s23 + $0x20] sm:$0xff] (%p1329_p4) }
 0x255   : > { %994 = vst.msk [vmem:[%s1538_s23 + $0x48] sm:$0xff] %vm984_vm3, %v963_v5  ;;  %v1084_v19 = vld [vmem:[%s1538_s23 + $0x40] sm:$0xff] (%p1329_p4) }
 0x256   : > { %999 = vst.msk [vmem:[%s1538_s23 + $0x70] sm:$0xff] %vm984_vm3, %v978_v4 }
 0x257   : > { %1077 = vst [vmem:[%s1009_s28 + $0x40] sm:$0xff] (%p1329_p4), %v1076_v13 }
 0x258   : > { %1085 = vst [vmem:[%s1009_s28 + $0x80] sm:$0xff] (%p1329_p4), %v1084_v19 }
 0x259   : > { %1089 = vst [vmem:[%s1009_s28 + $0xa0] sm:$0xff] (%p1329_p4), %v1088_v22 }
 0x25b   : > { %v972_v6 = vpop.f32.mrf.mxu2  ;;  %v981_v7 = vpop.f32.mrf.mxu3  ;;  %v1090_v23 = vld [vmem:[%s1538_s23 + $0x58] sm:$0xff] (%p1329_p4) }
 0x25c   : > { %997 = vst.msk [vmem:[%s1538_s23 + $0x60] sm:$0xff] %vm984_vm3, %v972_v6  ;;  %v1086_v21 = vld [vmem:[%s1538_s23 + $0x48] sm:$0xff] (%p1329_p4) }
 0x25d   : > { %1000 = vst.msk [vmem:[%s1538_s23 + $0x78] sm:$0xff] %vm984_vm3, %v981_v7  ;;  %v1096_v27 = vld [vmem:[%s1538_s23 + $0x70] sm:$0xff] (%p1329_p4) }
 0x25e   : > { %1087 = vst [vmem:[%s1009_s28 + $0x90] sm:$0xff] (%p1329_p4), %v1086_v21 }
 0x25f   : > { %1091 = vst [vmem:[%s1009_s28 + $0xb0] sm:$0xff] (%p1329_p4), %v1090_v23 }
 0x260   : > { %1007 = sbr.rel (!%p1329_p4) target bundleno = 621 (0x26d), region = 44  ;;  %1097 = vst [vmem:[%s1009_s28 + $0xe0] sm:$0xff] (%p1329_p4), %v1096_v27 }
 0x263   : > { %v975_v8 = vpop.f32.mrf.mxu2  ;;  %v1092_v24 = vld [vmem:[%s1538_s23 + $0x60] sm:$0xff] (%p1329_p4) }
 0x264   : > { %998 = vst.msk [vmem:[%s1538_s23 + $0x68] sm:$0xff] %vm984_vm3, %v975_v8  ;;  %v1098_v28 = vld [vmem:[%s1538_s23 + $0x78] sm:$0xff] (%p1329_p4) }
 0x265   : > { %1093 = vst [vmem:[%s1009_s28 + $0xc0] sm:$0xff] %v1092_v24 }
 0x266   : > { %1099 = vst [vmem:[%s1009_s28 + $0xf0] sm:$0xff] %v1098_v28 }
 0x26b   : > { %v1094_v25 = vld [vmem:[%s1538_s23 + $0x68] sm:$0xff] }
 0x26c   : > { %1095 = vst [vmem:[%s1009_s28 + $0xd0] sm:$0xff] %v1094_v25 }
 0x26d PF: > { %p12_p8 = scmp.ge.s32.totalorder %s1319_s22, 4   ;;  %s1611_s18 = smov %s1258_s19 }
 0x26e   : > { %s1612_s19 = smov %s1327_s25  ;;  %s1613_s20 = smov %s1319_s22 }
 0x26f   :  { %14 = sbr.rel (!%p12_p8) target bundleno = 2 (0x2), region = 109 }

</bundles_post_ra>
